<compile_context>
chip_gen: v7x
topology: tpu7x:2x2x1
jax: 0.10.0
libtpu: 0.0.40
codegen_flags: <defaults>
</compile_context>

<pallas_src>
import math

import jax
import jax.numpy as jnp
from jax.experimental import pallas as pl
from jax.experimental.pallas import tpu as pltpu

_CHUNK_BYTES = 2 << 20   # ~2 MiB per DMA chunk: >=85% of HBM roofline everywhere
_NUM_SLOTS = 4           # outstanding DMAs (rolling semaphore window)


def _resolve_view_shape(total, target_shape):
    """torch .view shape resolution (single -1 allowed, strict divisibility)."""
    shape = list(target_shape)
    if shape.count(-1) > 1:
        raise ValueError("only one dimension can be inferred (-1)")
    if shape.count(-1) == 1:
        known = math.prod(s for s in shape if s != -1)
        if known == 0 or total % known != 0:
            raise ValueError(f"cannot view {total} elements as {tuple(target_shape)}")
        shape[shape.index(-1)] = total // known
    shape = tuple(shape)
    if math.prod(shape) != total:
        raise ValueError(f"cannot view {total} elements as {shape}")
    return shape


def _make_hbm_copy_kernel(rows, chunk_rows, num_slots):
    """Pure HBM->HBM chunked DMA copy of a (rows, lanes) slab."""
    n_full = rows // chunk_rows
    rem = rows - n_full * chunk_rows

    def kernel(x_hbm, o_hbm, sem):
        def chunk(r0, slot):
            return pltpu.make_async_copy(
                x_hbm.at[pl.ds(r0, chunk_rows), :],
                o_hbm.at[pl.ds(r0, chunk_rows), :],
                sem.at[slot],
            )

        # Prime up to num_slots outstanding DMAs (static unroll, tiny count).
        for c in range(min(num_slots, n_full)):
            chunk(c * chunk_rows, c % num_slots).start()

        # Rolling window: wait chunk c, immediately start chunk c+num_slots.
        @pl.loop(0, n_full)
        def _(c):
            slot = c % num_slots
            chunk(c * chunk_rows, slot).wait()

            @pl.when(c + num_slots < n_full)
            def _():
                # Clamp keeps the traced descriptor in-bounds; the guard above
                # makes the clamp a no-op whenever the DMA actually executes.
                r0 = jnp.minimum((c + num_slots) * chunk_rows,
                                 (n_full - 1) * chunk_rows)
                chunk(r0, slot).start()

        # Statically-sized ragged tail (all full chunks already waited).
        if rem > 0:
            tail = pltpu.make_async_copy(
                x_hbm.at[pl.ds(n_full * chunk_rows, rem), :],
                o_hbm.at[pl.ds(n_full * chunk_rows, rem), :],
                sem.at[0],
            )
            tail.start()
            tail.wait()

    return kernel


def pallas_reshape(x, target_shape, *, materialize=False, _chunk_bytes=_CHUNK_BYTES):
    total = x.size
    shape = _resolve_view_shape(total, target_shape)

    # Primary path: a contiguous row-major view is metadata only (zero HBM
    # traffic).  Nothing inside a kernel can beat not running it.
    if not materialize:
        return jnp.reshape(x, shape)

    # Materialized copy requested.  If the flat stream cannot be laid out as
    # a lane-dense slab (or is empty), the metadata reshape is still
    # semantically identical -- use it.
    if total == 0 or total % 128 != 0:
        return jnp.reshape(x, shape)

    itemsize = jnp.dtype(x.dtype).itemsize
    nbytes = total * itemsize

    # Lane width: for a contiguous HBM->HBM DMA any multiple of 128 is
    # equivalent; prefer a wider one when it divides exactly.
    lanes = 512 if total % 512 == 0 else (256 if total % 256 == 0 else 128)
    rows = total // lanes
    row_bytes = lanes * itemsize

    # ~2 MiB DMA chunks, dtype-aware sublane multiple, clamped to the slab.
    base_rows = max(8, 32 // itemsize)
    chunk_rows = max(base_rows, (_chunk_bytes // row_bytes) // base_rows * base_rows)
    chunk_rows = min(chunk_rows, rows)

    slab = x.reshape(rows, lanes)   # metadata only (contiguous input)

    out_slab = pl.pallas_call(
        _make_hbm_copy_kernel(rows, chunk_rows, _NUM_SLOTS),
        out_shape=jax.ShapeDtypeStruct((rows, lanes), x.dtype),
        in_specs=[pl.BlockSpec(memory_space=pl.ANY)],
        out_specs=pl.BlockSpec(memory_space=pl.ANY),
        scratch_shapes=[pltpu.SemaphoreType.DMA((_NUM_SLOTS,))],
        cost_estimate=pl.CostEstimate(
            flops=0, transcendentals=0, bytes_accessed=2 * nbytes),
    )(slab)

    return out_slab.reshape(shape)


class Reshape:
    """Mirror of the PyTorch Reshape(nn.Module): forward(x) -> x.view(shape)."""

    def __init__(self, *args, materialize=False):
        self.shape = args
        self.materialize = materialize

    def __call__(self, x):
        return pallas_reshape(x, self.shape, materialize=self.materialize)


if __name__ == "__main__":
    key = jax.random.PRNGKey(0)
    # Module equivalent: Reshape(2, -1) applied to an NCHW tensor.
    x = jax.random.normal(key, (2, 4, 16, 16), dtype=jnp.float32)
    ref = x.reshape(2, -1)

    # 1) Default (primary) path: pure-metadata reshape.
    mod = Reshape(2, -1)
    y = mod(x)
    jax.block_until_ready(y)
    assert y.shape == ref.shape, (y.shape, ref.shape)
    assert jnp.array_equal(y, ref), "mismatch vs reference reshape (metadata path)"

    # 2) Explicit materialized copy: single HBM->HBM DMA path.
    y_copy = pallas_reshape(x, (2, -1), materialize=True)
    jax.block_until_ready(y_copy)
    assert y_copy.shape == ref.shape
    assert jnp.array_equal(y_copy, ref), "mismatch vs reference (DMA copy path)"

    # 3) Rolling-window + ragged-tail DMA path: force small chunks so that
    #    n_full > NUM_SLOTS and the tail copy is exercised.
    x2 = jax.random.normal(jax.random.PRNGKey(1), (41, 64, 64), dtype=jnp.float32)
    ref2 = x2.reshape(-1, 64)
    y2 = pallas_reshape(x2, (-1, 64), materialize=True, _chunk_bytes=64 << 10)
    jax.block_until_ready(y2)
    assert y2.shape == ref2.shape
    assert jnp.array_equal(y2, ref2), "mismatch vs reference (chunked DMA path)"

    print("KERNEL_OK")
</pallas_src>

<mosaic_0001>
module attributes {stable_mosaic.version = 11 : i64} {
  func.func @kernel(%arg0: memref<4x512xf32, #tpu.memory_space<any>>, %arg1: memref<4x512xf32, #tpu.memory_space<any>>, %arg2: memref<4x!tpu.dma_semaphore, #tpu.memory_space<semaphore_mem>>) attributes {dimension_semantics = [], scalar_prefetch = 0 : i64, scratch_operands = 1 : i64, tpu.core_type = #tpu.core_type<tc>} {
    %c0_i32 = arith.constant 0 : i32
    %c0_i32_0 = arith.constant 0 : i32
    %c0_i32_1 = arith.constant 0 : i32
    %0 = tpu.memref_slice %arg0[%c0_i32_0, %c0_i32_1] : memref<4x512xf32, #tpu.memory_space<any>> -> memref<4x512xf32, #tpu.memory_space<any>>
    %c0_i32_2 = arith.constant 0 : i32
    %c0_i32_3 = arith.constant 0 : i32
    %1 = tpu.memref_slice %arg1[%c0_i32_2, %c0_i32_3] : memref<4x512xf32, #tpu.memory_space<any>> -> memref<4x512xf32, #tpu.memory_space<any>>
    %2 = tpu.memref_slice %arg2[%c0_i32] : memref<4x!tpu.dma_semaphore, #tpu.memory_space<semaphore_mem>> -> memref<1x!tpu.dma_semaphore, #tpu.memory_space<semaphore_mem>>
    %3 = tpu.memref_squeeze %2 : memref<1x!tpu.dma_semaphore, #tpu.memory_space<semaphore_mem>> -> memref<!tpu.dma_semaphore, #tpu.memory_space<semaphore_mem>>
    tpu.enqueue_dma source(%0 : memref<4x512xf32, #tpu.memory_space<any>>) target(%1 : memref<4x512xf32, #tpu.memory_space<any>>) target_semaphore(%3 : memref<!tpu.dma_semaphore, #tpu.memory_space<semaphore_mem>>)
    %c0_i32_4 = arith.constant 0 : i32
    %c1_i32 = arith.constant 1 : i32
    %4 = arith.muli %c0_i32_4, %c1_i32 : i32
    %c0_i32_5 = arith.constant 0 : i32
    %5 = arith.addi %c0_i32_5, %4 : i32
    %c4_i32 = arith.constant 4 : i32
    %c0_i32_6 = arith.constant 0 : i32
    %6 = arith.cmpi eq, %c4_i32, %c0_i32_6 : i32
    %c1_i32_7 = arith.constant 1 : i32
    %7 = arith.select %6, %c1_i32_7, %c4_i32 : i32
    %8 = arith.remsi %5, %7 : i32
    %c0_i32_8 = arith.constant 0 : i32
    %9 = arith.cmpi ne, %8, %c0_i32_8 : i32
    %c0_i32_9 = arith.constant 0 : i32
    %10 = arith.cmpi slt, %8, %c0_i32_9 : i32
    %c0_i32_10 = arith.constant 0 : i32
    %11 = arith.cmpi slt, %7, %c0_i32_10 : i32
    %12 = arith.xori %10, %11 : i1
    %13 = arith.andi %12, %9 : i1
    %14 = arith.addi %8, %7 : i32
    %15 = arith.select %13, %14, %8 : i32
    %c4_i32_11 = arith.constant 4 : i32
    %16 = arith.muli %5, %c4_i32_11 : i32
    %c0_i32_12 = arith.constant 0 : i32
    %17 = tpu.memref_slice %arg0[%16, %c0_i32_12] : memref<4x512xf32, #tpu.memory_space<any>> -> memref<4x512xf32, #tpu.memory_space<any>>
    %c0_i32_13 = arith.constant 0 : i32
    %18 = tpu.memref_slice %arg1[%16, %c0_i32_13] : memref<4x512xf32, #tpu.memory_space<any>> -> memref<4x512xf32, #tpu.memory_space<any>>
    %19 = tpu.memref_slice %arg2[%15] : memref<4x!tpu.dma_semaphore, #tpu.memory_space<semaphore_mem>> -> memref<1x!tpu.dma_semaphore, #tpu.memory_space<semaphore_mem>>
    %20 = tpu.memref_squeeze %19 : memref<1x!tpu.dma_semaphore, #tpu.memory_space<semaphore_mem>> -> memref<!tpu.dma_semaphore, #tpu.memory_space<semaphore_mem>>
    tpu.wait_dma2 semaphore(%20 : memref<!tpu.dma_semaphore, #tpu.memory_space<semaphore_mem>>) src(%17 : memref<4x512xf32, #tpu.memory_space<any>>) dst(%18 : memref<4x512xf32, #tpu.memory_space<any>>)
    %c4_i32_14 = arith.constant 4 : i32
    %21 = arith.addi %5, %c4_i32_14 : i32
    %c1_i32_15 = arith.constant 1 : i32
    %22 = arith.cmpi slt, %21, %c1_i32_15 : i32
    %23 = arith.extui %22 : i1 to i32
    %c0_i32_16 = arith.constant 0 : i32
    %24 = arith.cmpi ne, %23, %c0_i32_16 : i32
    scf.if %24 {
      %c4_i32_18 = arith.constant 4 : i32
      %25 = arith.addi %5, %c4_i32_18 : i32
      %c4_i32_19 = arith.constant 4 : i32
      %26 = arith.muli %25, %c4_i32_19 : i32
      %c0_i32_20 = arith.constant 0 : i32
      %27 = arith.minsi %26, %c0_i32_20 : i32
      %c0_i32_21 = arith.constant 0 : i32
      %28 = tpu.memref_slice %arg0[%27, %c0_i32_21] : memref<4x512xf32, #tpu.memory_space<any>> -> memref<4x512xf32, #tpu.memory_space<any>>
      %c0_i32_22 = arith.constant 0 : i32
      %29 = tpu.memref_slice %arg1[%27, %c0_i32_22] : memref<4x512xf32, #tpu.memory_space<any>> -> memref<4x512xf32, #tpu.memory_space<any>>
      %30 = tpu.memref_slice %arg2[%15] : memref<4x!tpu.dma_semaphore, #tpu.memory_space<semaphore_mem>> -> memref<1x!tpu.dma_semaphore, #tpu.memory_space<semaphore_mem>>
      %31 = tpu.memref_squeeze %30 : memref<1x!tpu.dma_semaphore, #tpu.memory_space<semaphore_mem>> -> memref<!tpu.dma_semaphore, #tpu.memory_space<semaphore_mem>>
      tpu.enqueue_dma source(%28 : memref<4x512xf32, #tpu.memory_space<any>>) target(%29 : memref<4x512xf32, #tpu.memory_space<any>>) target_semaphore(%31 : memref<!tpu.dma_semaphore, #tpu.memory_space<semaphore_mem>>)
    } else {
    }
    %c1_i32_17 = arith.constant 1 : i32
    return
  }
}

</mosaic_0001>

<bundles_post_ra>
// kernel: tpu_custom_call.1
= control target key start
LH: loop header
LB: loop body
LE: loop exit
PB: predicated region body
PF: predicated region fallthrough
CT: control target
= control target key end

     0   :  { %s59_s6 = smov [#allocation2]   ;;  %s60_s7 = smov [#allocation3]   ;;  %s78_s0 = inlined_call_operand.hbm [shape: f32[4,512], index: 0, kind: input, shape index: {}]   ;;  %s79_s1 = inlined_call_operand.hbm [shape: f32[4,512], index: 1, kind: output, shape index: {}]  }
   0x1   :  { %s61_s8 = smov 0  }
   0x2   :  { %18 = dma.general %s78_s0, 256, %s79_s1, %s59_s6, %s60_s7, [#allocation4], %s61_s8, 0  }
   0x3   :  { %57 = dma.done.wait [#allocation2], 256 }
   0x4   :  { %58 = vsyncadd [#allocation2], 4294967040 }
   0x5   :  { %23 = vsyncmov [#allocation2] }
   0x8   :  { %s24_s13 = vpop.sfrf %23 }
   0x9   :  { %p50_p0 = scmp.ne.s32.totalorder %s24_s13, 0 }
   0xb   :  { %28 = shalt.err (%p50_p0)  }
   0xc   :  { %30 = vsyncmov [#allocation2 + $0x1] }
   0xf   :  { %s31_s14 = vpop.sfrf %30 }
  0x10   :  { %p51_p1 = scmp.ne.s32.totalorder %s31_s14, 0 }
  0x12   :  { %35 = shalt.err (%p51_p1)  }
  0x13   :  { %37 = vsyncmov [#allocation2 + $0x2] }
  0x16   :  { %s38_s15 = vpop.sfrf %37 }
  0x17   :  { %p52_p2 = scmp.ne.s32.totalorder %s38_s15, 0 }
  0x19   :  { %42 = shalt.err (%p52_p2)  }
  0x1a   :  { %44 = vsyncmov [#allocation2 + $0x3] }
  0x1d   :  { %s45_s16 = vpop.sfrf %44 }
  0x1e   :  { %p53_p3 = scmp.ne.s32.totalorder %s45_s16, 0 }
  0x20   :  { %49 = shalt.err (%p53_p3)  }

</bundles_post_ra>
